<compile_context>
chip_gen: v6e
topology: v6e:2x2x1
jax: 0.10.0
libtpu: 0.0.40
codegen_flags: <defaults>
</compile_context>

<pallas_src>
import functools

import jax
import jax.numpy as jnp
from jax.experimental import pallas as pl
from jax.experimental.pallas import tpu as pltpu


def _round_up(x: int, m: int) -> int:
    return ((x + m - 1) // m) * m


def _cdiv(a: int, b: int) -> int:
    return -(-a // b)


def _vmem_capacity_bytes() -> int:
    """Per-core VMEM capacity; conservative 64 MiB (v7x) if the query fails."""
    try:
        info = pltpu.get_tpu_info()
        cap = getattr(info, "vmem_capacity_bytes", None)
        if cap:
            return int(cap)
    except Exception:
        pass
    return 64 * 1024 * 1024


def _pick_batch_tile(B: int, sub: int) -> int:
    """Batch tile size.

    * tiny B: one tile rounded to the sublane quantum (8 for f32 x, 16 for bf16 x)
    * mid B (< 1024): exactly 2 tiles -> both v7x TensorCores get work and the
      tile usually divides B, so x passes through with no pad copy
    * large B: the biggest MXU-friendly tile (512, then 256) that divides B with
      >= 2 tiles; otherwise 256 with one padded tail tile.
    """
    if B < 64:
        return _round_up(max(B, sub), sub)
    if B < 1024:
        return _round_up(_cdiv(B, 2), sub)
    for tb in (512, 256):
        if B % tb == 0 and B // tb >= 2:
            return tb
    return 256


def _resident_spec(shape):
    """BlockSpec for a VMEM-resident operand (constant index_map).

    Single-buffered when the installed JAX supports pipeline_mode: the block
    index never changes, so double-buffering would only duplicate it in VMEM.
    """
    buffered = getattr(pl, "Buffered", None)
    if buffered is not None:
        try:
            return pl.BlockSpec(shape, lambda i: (0, 0), pipeline_mode=buffered(1))
        except TypeError:  # older jax without the pipeline_mode kwarg
            pass
    return pl.BlockSpec(shape, lambda i: (0, 0))


def lassonet_kernel(x_ref, wf_ref, b1_ref, w2t_ref, b2_ref, o_ref):
    """z = x @ [W1t | Wskip_t];  h = ReLU(z[:, :Hp] + b1);
    out = h @ W2t + b2 + z[:, Hp:].

    x is cast to bf16 in-kernel (no XLA pre-pass); f32 accumulation on the MXU;
    bias + ReLU + skip-add run on the f32 accumulator; final store is bf16.
    """
    hp = b1_ref.shape[-1]                         # padded hidden width (mult of 128)

    x = x_ref[...].astype(jnp.bfloat16)           # in-kernel cast, no extra HBM pass
    # One lane-dense matmul for both the first layer of G and the skip layer.
    z = jnp.dot(x, wf_ref[...], preferred_element_type=jnp.float32)   # (TB, Hp+Dp)

    h = jnp.maximum(z[:, :hp] + b1_ref[...], 0.0)                     # 128-aligned split
    y1 = jnp.dot(h.astype(w2t_ref.dtype), w2t_ref[...],
                 preferred_element_type=jnp.float32)                  # (TB, Dp) f32

    # bf16 lane-dense store (half the HBM writeback of f32).
    o_ref[...] = (y1 + b2_ref[...] + z[:, hp:]).astype(o_ref.dtype)


def prepare_params(w1, b1, w2, b2, w_skip):
    """One-time weight prep (transpose, zero-pad lane dims to 128, cast to bf16).

    Inputs follow the PyTorch Linear (out, in) convention:
      w1: (H, D_in), b1: (H,), w2: (D_out, H), b2: (D_out,), w_skip: (D_out, D_in).
    """
    H, D_in = w1.shape
    D_out = w2.shape[0]
    Hp = _round_up(H, 128)
    Dp = _round_up(D_out, 128)

    w1t = jnp.zeros((D_in, Hp), jnp.float32).at[:, :H].set(jnp.asarray(w1, jnp.float32).T)
    wst = jnp.zeros((D_in, Dp), jnp.float32).at[:, :D_out].set(jnp.asarray(w_skip, jnp.float32).T)
    # Fused LHS-shared weight: x @ [W1t | Wskip_t]  -> (D_in, Hp + Dp)
    wf = jnp.concatenate([w1t, wst], axis=1).astype(jnp.bfloat16)

    w2t = jnp.zeros((Hp, Dp), jnp.float32).at[:H, :D_out].set(
        jnp.asarray(w2, jnp.float32).T).astype(jnp.bfloat16)

    b1p = jnp.zeros((1, Hp), jnp.float32).at[0, :H].set(jnp.asarray(b1, jnp.float32))
    b2p = jnp.zeros((1, Dp), jnp.float32).at[0, :D_out].set(jnp.asarray(b2, jnp.float32))

    meta = dict(D_in=D_in, H=H, D_out=D_out, Hp=Hp, Dp=Dp)
    return (wf, b1p, w2t, b2p), meta


@functools.partial(jax.jit, static_argnames=("D_in", "H", "D_out", "Hp", "Dp"))
def lassonet_forward_prepared(x, wf, b1p, w2t, b2p, *, D_in, H, D_out, Hp, Dp):
    """x: (B, D_in) -> (B, D_out). Uses pre-padded/bf16 params from prepare_params."""
    B = x.shape[0]
    out_dtype = x.dtype
    x_itemsize = int(jnp.dtype(x.dtype).itemsize)
    sub = 16 if x.dtype == jnp.bfloat16 else 8          # sublane packing quantum

    TB = _pick_batch_tile(B, sub)
    nb = _cdiv(B, TB)
    B_pad = nb * TB
    if B_pad != B:
        # Only the ragged case pays a pad copy; the common case passes x straight
        # from HBM into the kernel's input DMA (no XLA pad/cast pre-pass).
        x = jnp.pad(x, ((0, B_pad - B), (0, 0)))

    # ---- VMEM budget (weights single-buffered, x/out tiles double-buffered) ----
    wf_item = int(jnp.dtype(wf.dtype).itemsize)
    weight_bytes = (wf.size + w2t.size) * wf_item + (b1p.size + b2p.size) * 4
    act_bytes = 2 * TB * (D_in * x_itemsize + Dp * 2)
    scratch_bytes = TB * (Hp + Dp) * 4 + TB * Hp * 4    # f32 z and h intermediates
    vmem_cap = _vmem_capacity_bytes()
    vmem_limit = int(min(int(vmem_cap * 0.85),
                         max(4 << 20, 2 * (weight_bytes + act_bytes + scratch_bytes))))
    # TODO(synk): when the resident weights exceed ~half of per-core VMEM (realistic
    # large-H/D_out LassoNets on v7x's 64 MiB/TC), add a second "arbitrary" grid axis
    # tiling the fused (Hp+Dp)/Dp lane dims with an f32 accumulator scratch instead of
    # relying on the weight-resident path.

    flops = 2 * B_pad * (D_in * (Hp + Dp) + Hp * Dp)
    bytes_accessed = B_pad * D_in * x_itemsize + B_pad * Dp * 2 + weight_bytes

    out = pl.pallas_call(
        lassonet_kernel,
        out_shape=jax.ShapeDtypeStruct((B_pad, Dp), jnp.bfloat16),
        grid=(nb,),
        in_specs=[
            pl.BlockSpec((TB, D_in), lambda i: (i, 0)),   # x: tiled over batch
            _resident_spec((D_in, Hp + Dp)),              # fused [W1t|Wskip_t]: resident
            _resident_spec((1, Hp)),                      # b1: resident
            _resident_spec((Hp, Dp)),                     # W2t: resident
            _resident_spec((1, Dp)),                      # b2: resident
        ],
        out_specs=pl.BlockSpec((TB, Dp), lambda i: (i, 0)),
        compiler_params=pltpu.CompilerParams(
            dimension_semantics=("parallel",),            # v7x: shard batch over 2 TCs
            vmem_limit_bytes=vmem_limit,
        ),
        cost_estimate=pl.CostEstimate(
            flops=flops, transcendentals=0, bytes_accessed=bytes_accessed),
    )(x, wf, b1p, w2t, b2p)

    # Slice away batch/lane padding and restore the caller's dtype (single small pass).
    return out[:B, :D_out].astype(out_dtype)


def lassonet_forward(x, w1, b1, w2, b2, w_skip):
    """Convenience wrapper: NOT for hot paths (re-pads/re-casts the weights each call).

    For repeated forward calls, run prepare_params once and call
    lassonet_forward_prepared directly.
    """
    params, meta = prepare_params(w1, b1, w2, b2, w_skip)
    return lassonet_forward_prepared(x, *params, **meta)


def lassonet_reference(x, w1, b1, w2, b2, w_skip):
    h = jnp.maximum(x @ w1.T + b1, 0.0)
    return h @ w2.T + b2 + x @ w_skip.T


if __name__ == "__main__":
    # Small shapes consistent with the module's forward: x is (B, D_in).
    B, D_in, H, D_out = 8, 32, 64, 16

    key = jax.random.PRNGKey(0)
    k_x, k_w1, k_b1, k_w2, k_b2, k_ws = jax.random.split(key, 6)

    x = jax.random.normal(k_x, (B, D_in), dtype=jnp.float32)
    w1 = jax.random.normal(k_w1, (H, D_in), dtype=jnp.float32) * (1.0 / D_in) ** 0.5
    b1 = jax.random.normal(k_b1, (H,), dtype=jnp.float32) * 0.01
    w2 = jax.random.normal(k_w2, (D_out, H), dtype=jnp.float32) * (1.0 / H) ** 0.5
    b2 = jax.random.normal(k_b2, (D_out,), dtype=jnp.float32) * 0.01
    w_skip = jax.random.normal(k_ws, (D_out, D_in), dtype=jnp.float32) * (1.0 / D_in) ** 0.5

    # Prepare padded/bf16 weights once (cached outside the per-call path).
    params, meta = prepare_params(w1, b1, w2, b2, w_skip)

    out = lassonet_forward_prepared(x, *params, **meta)
    out = jax.block_until_ready(out)

    ref = lassonet_reference(x, w1, b1, w2, b2, w_skip)
    assert out.shape == (B, D_out)
    assert out.dtype == x.dtype
    # bf16 operands / bf16 output store with f32 accumulation -> loosened tolerance
    # vs. the f32 reference (deliberate precision contract, incl. the skip path).
    assert jnp.allclose(out, ref, atol=3e-2, rtol=3e-2), (
        "mismatch vs reference, max abs diff = %s" % float(jnp.max(jnp.abs(out - ref))))

    print("KERNEL_OK")
</pallas_src>

<mosaic_0001>
module attributes {stable_mosaic.version = 11 : i64} {
  func.func @lassonet_kernel(%arg0: i32, %arg1: memref<8x32xf32, #tpu.memory_space<vmem>>, %arg2: memref<32x256xbf16, #tpu.memory_space<vmem>>, %arg3: memref<1x128xf32, #tpu.memory_space<vmem>>, %arg4: memref<128x128xbf16, #tpu.memory_space<vmem>>, %arg5: memref<1x128xf32, #tpu.memory_space<vmem>>, %arg6: memref<8x128xbf16, #tpu.memory_space<vmem>>) attributes {dimension_semantics = [#tpu.dimension_semantics<parallel>], iteration_bounds = array<i64: 1>, scalar_prefetch = 0 : i64, scratch_operands = 0 : i64, tpu.core_type = #tpu.core_type<tc>, window_params = [{transform_indices = @transform_0, window_bounds = array<i64: 8, 32>}, {pipeline_mode = #tpu.pipeline_mode<synchronous>, transform_indices = @transform_1, window_bounds = array<i64: 32, 256>}, {pipeline_mode = #tpu.pipeline_mode<synchronous>, transform_indices = @transform_2, window_bounds = array<i64: 1, 128>}, {pipeline_mode = #tpu.pipeline_mode<synchronous>, transform_indices = @transform_3, window_bounds = array<i64: 128, 128>}, {pipeline_mode = #tpu.pipeline_mode<synchronous>, transform_indices = @transform_4, window_bounds = array<i64: 1, 128>}, {transform_indices = @transform_5, window_bounds = array<i64: 8, 128>}]} {
    %c0 = arith.constant 0 : index
    %c0_0 = arith.constant 0 : index
    %0 = vector.load %arg1[%c0, %c0_0] : memref<8x32xf32, #tpu.memory_space<vmem>>, vector<8x32xf32>
    %1 = arith.truncf %0 : vector<8x32xf32> to vector<8x32xbf16>
    %c0_1 = arith.constant 0 : index
    %c0_2 = arith.constant 0 : index
    %2 = vector.load %arg2[%c0_1, %c0_2] : memref<32x256xbf16, #tpu.memory_space<vmem>>, vector<32x256xbf16>
    %cst = arith.constant dense<0.000000e+00> : vector<8x256xf32>
    %3 = tpu.matmul %1, %2, %cst {dimension_numbers = #tpu.dot_dimension_numbers<[1], [0], [0], [1], [0, 0, 1, 1], [], []>} : vector<8x32xbf16>, vector<32x256xbf16>, vector<8x256xf32> -> vector<8x256xf32>
    %4 = vector.extract_strided_slice %3 {offsets = [0, 0], sizes = [8, 128], strides = [1, 1]} : vector<8x256xf32> to vector<8x128xf32>
    %c0_3 = arith.constant 0 : index
    %c0_4 = arith.constant 0 : index
    %5 = vector.load %arg3[%c0_3, %c0_4] : memref<1x128xf32, #tpu.memory_space<vmem>>, vector<1x128xf32>
    %6 = vector.broadcast %5 : vector<1x128xf32> to vector<8x128xf32>
    %7 = arith.addf %4, %6 : vector<8x128xf32>
    %cst_5 = arith.constant 0.000000e+00 : f32
    %8 = vector.broadcast %cst_5 : f32 to vector<8x128xf32>
    %9 = arith.maximumf %7, %8 : vector<8x128xf32>
    %10 = arith.truncf %9 : vector<8x128xf32> to vector<8x128xbf16>
    %c0_6 = arith.constant 0 : index
    %c0_7 = arith.constant 0 : index
    %11 = vector.load %arg4[%c0_6, %c0_7] : memref<128x128xbf16, #tpu.memory_space<vmem>>, vector<128x128xbf16>
    %cst_8 = arith.constant dense<0.000000e+00> : vector<8x128xf32>
    %12 = tpu.matmul %10, %11, %cst_8 {dimension_numbers = #tpu.dot_dimension_numbers<[1], [0], [0], [1], [0, 0, 1, 1], [], []>} : vector<8x128xbf16>, vector<128x128xbf16>, vector<8x128xf32> -> vector<8x128xf32>
    %c0_9 = arith.constant 0 : index
    %c0_10 = arith.constant 0 : index
    %13 = vector.load %arg5[%c0_9, %c0_10] : memref<1x128xf32, #tpu.memory_space<vmem>>, vector<1x128xf32>
    %14 = vector.broadcast %13 : vector<1x128xf32> to vector<8x128xf32>
    %15 = arith.addf %12, %14 : vector<8x128xf32>
    %16 = vector.extract_strided_slice %3 {offsets = [0, 128], sizes = [8, 128], strides = [1, 1]} : vector<8x256xf32> to vector<8x128xf32>
    %17 = arith.addf %15, %16 : vector<8x128xf32>
    %18 = arith.truncf %17 : vector<8x128xf32> to vector<8x128xbf16>
    %c0_11 = arith.constant 0 : index
    %c0_12 = arith.constant 0 : index
    %19 = vector.load %arg6[%c0_11, %c0_12] : memref<8x128xbf16, #tpu.memory_space<vmem>>, vector<8x128xbf16>
    tpu.vector_store %arg6[%c0_11, %c0_12], %18 {strides = array<i32>} : memref<8x128xbf16, #tpu.memory_space<vmem>>, vector<8x128xbf16>,
    return
  }
  func.func @transform_0(%arg0: i32) -> (i32, i32) {
    %c0_i32 = arith.constant 0 : i32
    %c0_i32_0 = arith.constant 0 : i32
    return %arg0, %c0_i32 : i32, i32
  }
  func.func @transform_1(%arg0: i32) -> (i32, i32) {
    %c0_i32 = arith.constant 0 : i32
    %c0_i32_0 = arith.constant 0 : i32
    %c0_i32_1 = arith.constant 0 : i32
    return %c0_i32, %c0_i32_0 : i32, i32
  }
  func.func @transform_2(%arg0: i32) -> (i32, i32) {
    %c0_i32 = arith.constant 0 : i32
    %c0_i32_0 = arith.constant 0 : i32
    %c0_i32_1 = arith.constant 0 : i32
    return %c0_i32, %c0_i32_0 : i32, i32
  }
  func.func @transform_3(%arg0: i32) -> (i32, i32) {
    %c0_i32 = arith.constant 0 : i32
    %c0_i32_0 = arith.constant 0 : i32
    %c0_i32_1 = arith.constant 0 : i32
    return %c0_i32, %c0_i32_0 : i32, i32
  }
  func.func @transform_4(%arg0: i32) -> (i32, i32) {
    %c0_i32 = arith.constant 0 : i32
    %c0_i32_0 = arith.constant 0 : i32
    %c0_i32_1 = arith.constant 0 : i32
    return %c0_i32, %c0_i32_0 : i32, i32
  }
  func.func @transform_5(%arg0: i32) -> (i32, i32) {
    %c0_i32 = arith.constant 0 : i32
    %c0_i32_0 = arith.constant 0 : i32
    return %arg0, %c0_i32 : i32, i32
  }
}

</mosaic_0001>

<bundles_post_ra>
// kernel: lassonet_forward_prepared.1
= control target key start
LH: loop header
LB: loop body
LE: loop exit
PB: predicated region body
PF: predicated region fallthrough
CT: control target
= control target key end

     0   :  { %10 = vsyncpa [#allocation3], 0  ;;  %s451_s0 = inlined_call_operand.hbm [shape: f32[8,32], index: 0, kind: input, shape index: {}]   ;;  %s452_s1 = inlined_call_operand.hbm [shape: bf16[32,256], index: 1, kind: input, shape index: {}]   ;;  %s453_s2 = inlined_call_operand.vmem [shape: f32[1,128], index: 2, kind: input, shape index: {}]   ;;  %s454_s3 = inlined_call_operand.hbm [shape: bf16[128,128], index: 3, kind: input, shape index: {}]   ;;  %s455_s4 = inlined_call_operand.vmem [shape: f32[1,128], index: 4, kind: input, shape index: {}]   ;;  %s456_s5 = inlined_call_operand.vmem [shape: bf16[8,128], index: 5, kind: output, shape index: {}]  }
   0x1   :  { %11 = vsyncpa [#allocation5], 0  ;;  %s393_s18 = smov [#allocation4]  }
   0x2   :  { %s27_s19 = sshll.u32 %s393_s18, 4  ;;  %s28_s19 = int_to_ptr.vmem [resolvable:$true] %s27_s19 }
   0x3   :  { %s337_s20 = scalar_lea.vmem %s28_s19, 512  ;;  %p342_p1 = scmp.lt.s32.totalorder %s28_s19, %s28_s19 }
   0x4   :  { %p338_p0 = scmp.ne.s32.totalorder %s28_s19, %s337_s20  ;;  %p343_p2 = scmp.lt.s32.totalorder %s337_s20, %s337_s20 }
   0x6   :  { %p344_p3 = por %p343_p2, %p342_p1 }
   0x8   :  { %p345_p4 = pnand %p344_p3, %p338_p0 }
   0xa   :  { %348 = shalt.err (!%p345_p4)
}
   0xb   :  { %s394_s21 = smov 128   ;;  %s395_s22 = smov 8  }
   0xc   :  { %33 = dma.hbm_to_vmem [thread:$0]  %s452_s1, 512, %s28_s19, [#allocation5], %s394_s21, %s394_s21, %s395_s22  }
   0xd   :  { %s396_s25 = smov [#allocation2]   ;;  %s397_s27 = smov [#allocation6]  }
   0xe   :  { %s18_s26 = sshll.u32 %s396_s25, 4  ;;  %s41_s28 = sshll.u32 %s397_s27, 4  ;;  %s19_s26 = int_to_ptr.vmem [resolvable:$true] %s18_s26  ;;  %s42_s28 = int_to_ptr.vmem [resolvable:$true] %s41_s28 }
   0xf   :  { %s357_s29 = scalar_lea.vmem %s19_s26, 128  ;;  %p362_p6 = scmp.lt.s32.totalorder %s19_s26, %s19_s26 }
  0x10   :  { %p358_p5 = scmp.ne.s32.totalorder %s19_s26, %s357_s29  ;;  %p363_p7 = scmp.lt.s32.totalorder %s357_s29, %s357_s29 }
  0x12   :  { %p364_p8 = por %p363_p7, %p362_p6 }
  0x14   :  { %p365_p9 = pnand %p364_p8, %p358_p5 }
  0x16   :  { %368 = shalt.err (!%p365_p9)
}
  0x17   :  { %21 = dma.hbm_to_vmem [thread:$0]  %s451_s0, 128, %s19_s26, [#allocation3]  }
  0x18   :  { %s377_s7 = scalar_lea.vmem %s42_s28, 1024  ;;  %p382_p11 = scmp.lt.s32.totalorder %s42_s28, %s42_s28 }
  0x19   :  { %p378_p10 = scmp.ne.s32.totalorder %s42_s28, %s377_s7  ;;  %p383_p12 = scmp.lt.s32.totalorder %s377_s7, %s377_s7 }
  0x1b   :  { %p384_p13 = por %p383_p12, %p382_p11 }
  0x1d   :  { %p385_p0 = pnand %p384_p13, %p378_p10 }
  0x1f   :  { %388 = shalt.err (!%p385_p0)
}
  0x20   :  { %s398_s1 = smov 64   ;;  %s399_s8 = smov 4  }
  0x21   :  { %47 = dma.hbm_to_vmem [thread:$0]  %s454_s3, 1024, %s42_s28, [#allocation5], %s398_s1, %s398_s1, %s399_s8  }
  0x22   :  { %389 = dma.done.wait [#allocation3], 128  }
  0x23   :  { %390 = vsyncadd [#allocation3], 4294967168 }
  0x24   :  { %391 = dma.done.wait [#allocation5], 1536  }
  0x25   :  { %392 = vsyncadd [#allocation5], 4294965760  ;;  %v400_v0 = vmov 0   ;;  %v401_v1 = vmov 0.0   ;;  %v315_v2 = vld [vmem:[#allocation4 + $0x14] ss:$8 sps:$4 sm:$0xff]  }
  0x26   :  { %122 = vmatprep.mubr.bf16.mxu0 %v400_v0  ;;  %285 = vmatprep.subr.bf16.mxu1 %v401_v1  ;;  %v317_v3 = vld [vmem:[#allocation4 + $0x10] ss:$8 sps:$4 sm:$0xff]   ;;  %v318_v4 = vld [vmem:[#allocation4 + $0x4] ss:$8 sps:$4 sm:$0xff]   ;;  %v320_v5 = vld [vmem:[#allocation4] ss:$8 sps:$4 sm:$0xff]  }
  0x27   :  { %102 = vmatprep.subr.bf16.mxu0 %v315_v2  ;;  %v60_v6 = vld [vmem:[#allocation2] sm:$0xff]  ;;  %v322_v8 = vld [vmem:[#allocation6 + $0x30] sm:$0xff]   ;;  %vm86_vm0 = vcmask 261120   ;;  %v323_v10 = vld [vmem:[#allocation6 + $0x28] sm:$0xff]   ;;  %vm402_vm1 = vmmov 0  }
  0x28   :  { %103 = vmatpush1.bf16.msra.mxu0 %v317_v3  ;;  %v321_v7 = vld [vmem:[#allocation6 + $0x38] sm:$0xff]   ;;  %v61_v9 = vpack.c.bf16 %v60_v6, %v60_v6  ;;  %v324_v11 = vld [vmem:[#allocation6 + $0x20] sm:$0xff]   ;;  %v326_v13 = vld [vmem:[#allocation6 + $0x10] sm:$0xff]   ;;  %301 = vmatprep.mubr.msk.bf16.mxu1 %vm402_vm1, %v401_v1 }
  0x29   :  { %104 = vmatprep.subr.bf16.mxu0 %v318_v4  ;;  %286 = vmatpush3.bf16.msra.mxu1 %v321_v7  ;;  %v325_v12 = vld [vmem:[#allocation6 + $0x18] sm:$0xff]   ;;  %v327_v14 = vld [vmem:[#allocation6 + $0x8] sm:$0xff]   ;;  %v328_v15 = vld [vmem:[#allocation6] sm:$0xff]  }
  0x2a   :  { %287 = vmatprep.subr.bf16.mxu1 %v401_v1  ;;  %v266_v16 = vld [vmem:[%s453_s2] ss:$0 sm:$0xff] }
  0x2b   :  { %v267_v24 = vld [vmem:[%s455_s4] ss:$0 sm:$0xff] }
  0x2c   :  { %105 = vmatpush1.bf16.msra.mxu0 %v320_v5 }
  0x2d   :  { %288 = vmatpush3.bf16.msra.mxu1 %v322_v8 }
  0x2e   :  { %289 = vmatprep.subr.bf16.mxu1 %v401_v1 }
  0x2f   :  { %265 = vmatmul.mubr.msk.bf16.vlgmr.msra.gmra.mxu0 %vm86_vm0, %v61_v9 }
  0x31   :  { %290 = vmatpush3.bf16.msra.mxu1 %v323_v10 }
  0x32   :  { %291 = vmatprep.subr.bf16.mxu1 %v401_v1 }
  0x35   :  { %292 = vmatpush3.bf16.msra.mxu1 %v324_v11 }
  0x36   :  { %293 = vmatprep.subr.bf16.mxu1 %v401_v1 }
  0x39   :  { %294 = vmatpush3.bf16.msra.mxu1 %v325_v12 }
  0x3a   :  { %295 = vmatprep.subr.bf16.mxu1 %v401_v1 }
  0x3d   :  { %296 = vmatpush3.bf16.msra.mxu1 %v326_v13 }
  0x3e   :  { %297 = vmatprep.subr.bf16.mxu1 %v401_v1 }
  0x41   :  { %298 = vmatpush3.bf16.msra.mxu1 %v327_v14 }
  0x42   :  { %299 = vmatprep.subr.bf16.mxu1 %v401_v1 }
  0x45   :  { %300 = vmatpush3.bf16.msra.mxu1 %v328_v15 }
  0xef   :  { %v124_v17 = vpop.f32.mrf.mxu0 }
  0xf0   :  { %v138_v18 = vadd.f32 %v266_v16, %v124_v17 }
  0xf1   :  { %v126_v19 = vpop.f32.mrf.mxu0 }
  0xf2   :  { %v139_v20 = vmax.f32 %v138_v18, 0.0 }
  0xf3   :  { %v128_v21 = vpop.f32.mrf.mxu0 }
  0xf4   :  { %v140_v22 = vpack.c.bf16 %v139_v20, %v139_v20 }
  0xf5   :  { %v129_v23 = vpop.f32.mrf.mxu0 }
  0xf6   :  { %302 = vmatmul.mubr.bf16.vlgmr.msra.gmra.mxu1 %v140_v22 }
 0x1b6   :  { %v246_v25 = vpop.f32.mrf.mxu1 }
 0x1b7   :  { %v247_v26 = vadd.f32 %v267_v24, %v246_v25 }
 0x1b8   :  { %v303_v27 = vpop.f32.mrf.mxu1 }
 0x1b9   :  { %v252_v28 = vadd.f32 %v247_v26, %v126_v19 }
 0x1ba   :  { %v249_v29 = vpop.f32.mrf.mxu1 }
 0x1bb   :  { %v253_v30 = vpack.c.bf16 %v252_v28, %v252_v28 }
 0x1bc   :  { %v304_v31 = vpop.f32.mrf.mxu1 }
 0x1bd   :  { %254 = vst [vmem:[%s456_s5] sm:$0xf] %v253_v30 }
 0x1be   :  { %259 = vsyncpa [#allocation3], 1 }
 0x1bf   :  { %260 = vsyncpa [#allocation5], 1 }

</bundles_post_ra>
